<compile_context>
chip_gen: v7x
topology: tpu7x:2x2x1
jax: 0.10.0
libtpu: 0.0.40
codegen_flags: <defaults>
</compile_context>

<pallas_src>
import jax
import jax.numpy as jnp
from jax.experimental import pallas as pl
from jax.experimental.pallas import tpu as pltpu


def _cdiv(a, b):
    return -(-a // b)


def _detect_num_cores():
    """Best-effort TensorCore count (2 on multi-TC chips, else 1)."""
    try:
        info = pltpu.get_tpu_info()
    except Exception:
        return 1
    for name in ("num_tensorcores", "tensorcore_count", "num_cores", "cores_per_chip"):
        val = getattr(info, name, None)
        if isinstance(val, int) and 1 <= val <= 8:
            return min(val, 2)
    return 1


def _make_kernel(rows_blk, rows_total, steps_per_core):
    def kernel(p_ref, t_ref, w_ref, out_ref):
        step = pl.program_id(1)

        # This core's resident (8, 32) accumulator block.
        @pl.when(step == 0)
        def _init():
            out_ref[...] = jnp.zeros_like(out_ref)

        p = p_ref[...].astype(jnp.float32)                    # (rows_blk, 128)
        t = jnp.maximum(t_ref[...].astype(jnp.float32), 0.0)  # target.clamp(min=0)
        mn = jnp.minimum(p, t)

        def shift_left(x, k):
            # out[:, j] = x[:, (j + k) % 128]
            # TODO(synk): switch to pltpu.roll (XLU slot) once its shift
            # direction is validated on hardware; concat-of-slices is the
            # semantically unambiguous fallback and is hidden under DMA.
            return jnp.concatenate([x[:, k:], x[:, :k]], axis=-1)

        def area(x):
            # lane 4k : l + r     lane 4k+1 : t + b      (other lanes are junk)
            s = x + shift_left(x, 2)
            # lane 4k : (l + r) * (t + b)
            return s * shift_left(s, 1)

        area_p = area(p)
        area_g = area(t)
        area_i = area(mn)
        area_u = area_p + area_g - area_i

        # Compact the per-box results from lanes {4k} of the 128-wide rows to a
        # dense 32-lane layout matching the (rows_blk, 32) weight view, using a
        # 0/1 selection matrix on the MXU (junk lanes multiply by exactly 0).
        lane = jax.lax.broadcasted_iota(jnp.int32, (128, 32), 0)
        box = jax.lax.broadcasted_iota(jnp.int32, (128, 32), 1)
        sel = (lane == 4 * box).astype(jnp.float32)            # (128, 32)
        area_i_c = jnp.dot(area_i, sel, preferred_element_type=jnp.float32)
        area_u_c = jnp.dot(area_u, sel, preferred_element_type=jnp.float32)

        # Narrow (32-lane) tail: divide / log / weight multiply at 1/4 width.
        iou = area_i_c / area_u_c
        loss = -jnp.log(jnp.maximum(iou, 1e-7))
        contrib = w_ref[...].astype(jnp.float32) * loss        # (rows_blk, 32)

        def fold(x):
            return jnp.sum(x.reshape(rows_blk // 8, 8, 32), axis=0)

        blk = pl.program_id(0) * steps_per_core + step          # unclamped block id
        valid_rows = rows_total - blk * rows_blk

        # Fast path: full block, no per-row masking (the common case).
        @pl.when(valid_rows >= rows_blk)
        def _full():
            out_ref[...] += fold(contrib)

        # Slow path: ragged last block / duplicated clamped overhang block.
        @pl.when(valid_rows < rows_blk)
        def _partial():
            row = jax.lax.broadcasted_iota(jnp.int32, (rows_blk, 32), 0)
            out_ref[...] += fold(jnp.where(row < valid_rows, contrib, 0.0))

    return kernel


def _weighted_loss_sum_ref(pred, target, weight):
    """Pure-JAX unnormalized sum(weight * loss), mirroring the PyTorch code."""
    pred = pred.astype(jnp.float32)
    target = jnp.maximum(target.astype(jnp.float32), 0.0)
    weight = weight.astype(jnp.float32)
    area_p = (pred[:, 0] + pred[:, 2]) * (pred[:, 1] + pred[:, 3])
    area_g = (target[:, 0] + target[:, 2]) * (target[:, 1] + target[:, 3])
    area_i = ((jnp.minimum(pred[:, 0], target[:, 0]) + jnp.minimum(pred[:, 2], target[:, 2]))
              * (jnp.minimum(pred[:, 1], target[:, 1]) + jnp.minimum(pred[:, 3], target[:, 3])))
    area_u = area_p + area_g - area_i
    iou = area_i / area_u
    return jnp.sum(weight * -jnp.log(jnp.maximum(iou, 1e-7)))


def _canon(x):
    if x.dtype == jnp.float32 or x.dtype == jnp.bfloat16:
        return x
    return x.astype(jnp.float32)


def select_iou_loss_pallas(pred, target, weight, avg_factor=None, loss_weight=1.0,
                           tile_boxes=131072, num_cores=None):
    """pred, target: (N, 4) box-side distances; weight: (N,). Returns a scalar."""
    n = pred.shape[0]
    assert pred.shape == (n, 4) and target.shape == (n, 4) and weight.shape == (n,)

    pred = _canon(pred)
    target = _canon(target)
    weight = _canon(weight)

    if avg_factor is None:
        avg = jnp.float32(n)
    else:
        avg = jnp.asarray(avg_factor, jnp.float32)

    # Alignment needed for the free (N, 4) -> (N/32, 128) view plus 8-row
    # (16-row for 16-bit dtypes) tiling of blocks.
    row_align = 8
    for a in (pred, target, weight):
        if a.dtype.itemsize < 4:
            row_align = 16
    granule = 32 * row_align
    n_main = (n // granule) * granule

    if n_main == 0:
        total = _weighted_loss_sum_ref(pred, target, weight)
        return loss_weight * total / avg

    if n_main == n:
        pred_m, target_m, weight_m = pred, target, weight
        tail_sum = jnp.float32(0.0)
    else:
        # Small tail (< granule boxes) handled in pure JAX; aligned prefix goes
        # to the kernel unmodified (no full-array pad).
        # TODO(synk): XLA may still materialize the prefix slices for
        # misaligned N; a 1-D-block kernel view would make this fully copy-free.
        pred_m, target_m, weight_m = pred[:n_main], target[:n_main], weight[:n_main]
        tail_sum = _weighted_loss_sum_ref(pred[n_main:], target[n_main:], weight[n_main:])

    rows_total = n_main // 32
    pred_v = pred_m.reshape(rows_total, 128)     # free reshape, interleaved [l,t,r,b]*32
    target_v = target_m.reshape(rows_total, 128)
    weight_v = weight_m.reshape(rows_total, 32)  # free reshape, box k of row r -> lane k

    desired_rows = max(row_align,
                       (max(tile_boxes, granule) // 32 // row_align) * row_align)
    rows_blk = min(desired_rows, rows_total)
    row_blocks_total = _cdiv(rows_total, rows_blk)

    if num_cores is None:
        num_cores = _detect_num_cores()
    num_cores = max(1, min(int(num_cores), row_blocks_total))
    steps_per_core = _cdiv(row_blocks_total, num_cores)
    grid = (num_cores, steps_per_core)

    def in_map(c, i):
        # Clamp so the DMA origin stays in-bounds; overhang blocks are masked
        # to zero inside the kernel via the unclamped valid-row count.
        return (jnp.minimum(c * steps_per_core + i, row_blocks_total - 1), 0)

    kernel = _make_kernel(rows_blk, rows_total, steps_per_core)

    out = pl.pallas_call(
        kernel,
        out_shape=jax.ShapeDtypeStruct((num_cores * 8, 32), jnp.float32),
        grid_spec=pltpu.PrefetchScalarGridSpec(
            num_scalar_prefetch=0,
            grid=grid,
            in_specs=[
                pl.BlockSpec((rows_blk, 128), in_map),
                pl.BlockSpec((rows_blk, 128), in_map),
                pl.BlockSpec((rows_blk, 32), in_map),
            ],
            out_specs=pl.BlockSpec((8, 32), lambda c, i: (c, 0)),
        ),
        compiler_params=pltpu.CompilerParams(
            dimension_semantics=("parallel", "arbitrary"),
            vmem_limit_bytes=48 * 1024 * 1024),
        cost_estimate=pl.CostEstimate(
            flops=600 * n_main,
            transcendentals=2 * n_main,
            bytes_accessed=36 * n_main + num_cores * 8 * 32 * 4),
    )(pred_v, target_v, weight_v)

    total = jnp.sum(out) + tail_sum
    return loss_weight * total / avg


if __name__ == "__main__":
    key = jax.random.PRNGKey(0)

    def make(n):
        k1, k2, k3 = jax.random.split(jax.random.fold_in(key, n), 3)
        # Positive box-side distances (l, t, r, b); target may contain negatives
        # (clamped to 0 inside, matching the PyTorch code).
        pred = jax.random.uniform(k1, (n, 4), jnp.float32, minval=0.1, maxval=5.0)
        target = jax.random.uniform(k2, (n, 4), jnp.float32, minval=-0.5, maxval=5.0)
        weight = jax.random.uniform(k3, (n,), jnp.float32, minval=0.0, maxval=1.0)
        return pred, target, weight

    # Case 1: aligned N, single-block grid, default avg_factor.
    p, t, w = make(2048)
    got = jax.block_until_ready(select_iou_loss_pallas(p, t, w))
    ref = _weighted_loss_sum_ref(p, t, w) / jnp.float32(2048)
    assert jnp.allclose(got, ref, rtol=1e-4, atol=1e-5), (2048, got, ref)

    # Case 2: ragged N (small tail handled outside the kernel), explicit
    # avg_factor and loss_weight.
    p, t, w = make(2309)
    got = jax.block_until_ready(
        select_iou_loss_pallas(p, t, w, avg_factor=123.0, loss_weight=2.0))
    ref = 2.0 * _weighted_loss_sum_ref(p, t, w) / jnp.float32(123.0)
    assert jnp.allclose(got, ref, rtol=1e-4, atol=1e-5), (2309, got, ref)

    # Case 3: tiny tiles -> multi-block grid with a partial last block, a
    # 2-entry core axis and a masked overhang block.
    p, t, w = make(1300)
    got = jax.block_until_ready(
        select_iou_loss_pallas(p, t, w, tile_boxes=512, num_cores=2))
    ref = _weighted_loss_sum_ref(p, t, w) / jnp.float32(1300)
    assert jnp.allclose(got, ref, rtol=1e-4, atol=1e-5), (1300, got, ref)

    print("KERNEL_OK")
</pallas_src>

<mosaic_0001>
module attributes {stable_mosaic.version = 11 : i64} {
  func.func @kernel(%arg0: i32, %arg1: i32, %arg2: memref<64x128xf32, #tpu.memory_space<vmem>>, %arg3: memref<64x128xf32, #tpu.memory_space<vmem>>, %arg4: memref<64x32xf32, #tpu.memory_space<vmem>>, %arg5: memref<8x32xf32, #tpu.memory_space<vmem>>) attributes {dimension_semantics = [#tpu.dimension_semantics<parallel>, #tpu.dimension_semantics<arbitrary>], iteration_bounds = array<i64: 1, 1>, scalar_prefetch = 0 : i64, scratch_operands = 0 : i64, tpu.core_type = #tpu.core_type<tc>, window_params = [{transform_indices = @transform_0, window_bounds = array<i64: 64, 128>}, {transform_indices = @transform_1, window_bounds = array<i64: 64, 128>}, {transform_indices = @transform_2, window_bounds = array<i64: 64, 32>}, {transform_indices = @transform_3, window_bounds = array<i64: 8, 32>}]} {
    %c0_i32 = arith.constant 0 : i32
    %0 = arith.cmpi eq, %arg1, %c0_i32 : i32
    %1 = arith.extui %0 : i1 to i32
    %c0_i32_0 = arith.constant 0 : i32
    %2 = arith.cmpi ne, %1, %c0_i32_0 : i32
    scf.if %2 {
      %cst_15 = arith.constant 0.000000e+00 : f32
      %61 = vector.broadcast %cst_15 : f32 to vector<8x32xf32>
      %c0_16 = arith.constant 0 : index
      %c0_17 = arith.constant 0 : index
      %62 = vector.load %arg5[%c0_16, %c0_17] : memref<8x32xf32, #tpu.memory_space<vmem>>, vector<8x32xf32>
      tpu.vector_store %arg5[%c0_16, %c0_17], %61 {strides = array<i32>} : memref<8x32xf32, #tpu.memory_space<vmem>>, vector<8x32xf32>,
    } else {
    }
    %c0 = arith.constant 0 : index
    %c0_1 = arith.constant 0 : index
    %3 = vector.load %arg2[%c0, %c0_1] : memref<64x128xf32, #tpu.memory_space<vmem>>, vector<64x128xf32>
    %c0_2 = arith.constant 0 : index
    %c0_3 = arith.constant 0 : index
    %4 = vector.load %arg3[%c0_2, %c0_3] : memref<64x128xf32, #tpu.memory_space<vmem>>, vector<64x128xf32>
    %cst = arith.constant 0.000000e+00 : f32
    %5 = vector.broadcast %cst : f32 to vector<64x128xf32>
    %6 = arith.maximumf %4, %5 : vector<64x128xf32>
    %7 = arith.minimumf %3, %6 : vector<64x128xf32>
    %8 = vector.extract_strided_slice %3 {offsets = [0, 2], sizes = [64, 126], strides = [1, 1]} : vector<64x128xf32> to vector<64x126xf32>
    %9 = vector.extract_strided_slice %3 {offsets = [0, 0], sizes = [64, 2], strides = [1, 1]} : vector<64x128xf32> to vector<64x2xf32>
    %10 = tpu.concatenate %8, %9 in 1 : vector<64x126xf32>, vector<64x2xf32> -> vector<64x128xf32>
    %11 = arith.addf %3, %10 : vector<64x128xf32>
    %12 = vector.extract_strided_slice %11 {offsets = [0, 1], sizes = [64, 127], strides = [1, 1]} : vector<64x128xf32> to vector<64x127xf32>
    %13 = vector.extract_strided_slice %11 {offsets = [0, 0], sizes = [64, 1], strides = [1, 1]} : vector<64x128xf32> to vector<64x1xf32>
    %14 = tpu.concatenate %12, %13 in 1 : vector<64x127xf32>, vector<64x1xf32> -> vector<64x128xf32>
    %15 = arith.mulf %11, %14 : vector<64x128xf32>
    %16 = vector.extract_strided_slice %6 {offsets = [0, 2], sizes = [64, 126], strides = [1, 1]} : vector<64x128xf32> to vector<64x126xf32>
    %17 = vector.extract_strided_slice %6 {offsets = [0, 0], sizes = [64, 2], strides = [1, 1]} : vector<64x128xf32> to vector<64x2xf32>
    %18 = tpu.concatenate %16, %17 in 1 : vector<64x126xf32>, vector<64x2xf32> -> vector<64x128xf32>
    %19 = arith.addf %6, %18 : vector<64x128xf32>
    %20 = vector.extract_strided_slice %19 {offsets = [0, 1], sizes = [64, 127], strides = [1, 1]} : vector<64x128xf32> to vector<64x127xf32>
    %21 = vector.extract_strided_slice %19 {offsets = [0, 0], sizes = [64, 1], strides = [1, 1]} : vector<64x128xf32> to vector<64x1xf32>
    %22 = tpu.concatenate %20, %21 in 1 : vector<64x127xf32>, vector<64x1xf32> -> vector<64x128xf32>
    %23 = arith.mulf %19, %22 : vector<64x128xf32>
    %24 = vector.extract_strided_slice %7 {offsets = [0, 2], sizes = [64, 126], strides = [1, 1]} : vector<64x128xf32> to vector<64x126xf32>
    %25 = vector.extract_strided_slice %7 {offsets = [0, 0], sizes = [64, 2], strides = [1, 1]} : vector<64x128xf32> to vector<64x2xf32>
    %26 = tpu.concatenate %24, %25 in 1 : vector<64x126xf32>, vector<64x2xf32> -> vector<64x128xf32>
    %27 = arith.addf %7, %26 : vector<64x128xf32>
    %28 = vector.extract_strided_slice %27 {offsets = [0, 1], sizes = [64, 127], strides = [1, 1]} : vector<64x128xf32> to vector<64x127xf32>
    %29 = vector.extract_strided_slice %27 {offsets = [0, 0], sizes = [64, 1], strides = [1, 1]} : vector<64x128xf32> to vector<64x1xf32>
    %30 = tpu.concatenate %28, %29 in 1 : vector<64x127xf32>, vector<64x1xf32> -> vector<64x128xf32>
    %31 = arith.mulf %27, %30 : vector<64x128xf32>
    %32 = arith.addf %15, %23 : vector<64x128xf32>
    %33 = arith.subf %32, %31 : vector<64x128xf32>
    %34 = tpu.iota {dimensions = array<i32: 0>} : vector<128x32xi32>
    %35 = tpu.iota {dimensions = array<i32: 1>} : vector<128x32xi32>
    %c4_i32 = arith.constant 4 : i32
    %36 = vector.broadcast %c4_i32 : i32 to vector<128x32xi32>
    %37 = arith.muli %36, %35 : vector<128x32xi32>
    %38 = arith.cmpi eq, %34, %37 : vector<128x32xi32>
    %39 = arith.extui %38 : vector<128x32xi1> to vector<128x32xi32>
    %40 = arith.sitofp %39 : vector<128x32xi32> to vector<128x32xf32>
    %cst_4 = arith.constant dense<0.000000e+00> : vector<64x32xf32>
    %41 = tpu.matmul %31, %40, %cst_4 {dimension_numbers = #tpu.dot_dimension_numbers<[1], [0], [0], [1], [0, 0, 1, 1], [], []>} : vector<64x128xf32>, vector<128x32xf32>, vector<64x32xf32> -> vector<64x32xf32>
    %cst_5 = arith.constant dense<0.000000e+00> : vector<64x32xf32>
    %42 = tpu.matmul %33, %40, %cst_5 {dimension_numbers = #tpu.dot_dimension_numbers<[1], [0], [0], [1], [0, 0, 1, 1], [], []>} : vector<64x128xf32>, vector<128x32xf32>, vector<64x32xf32> -> vector<64x32xf32>
    %43 = arith.divf %41, %42 : vector<64x32xf32>
    %cst_6 = arith.constant 1.000000e-07 : f32
    %44 = vector.broadcast %cst_6 : f32 to vector<64x32xf32>
    %45 = arith.maximumf %43, %44 : vector<64x32xf32>
    %46 = math.log %45 : vector<64x32xf32>
    %cst_7 = arith.constant 0.000000e+00 : f32
    %47 = vector.broadcast %cst_7 : f32 to vector<64x32xf32>
    %48 = arith.subf %47, %46 : vector<64x32xf32>
    %c0_8 = arith.constant 0 : index
    %c0_9 = arith.constant 0 : index
    %49 = vector.load %arg4[%c0_8, %c0_9] : memref<64x32xf32, #tpu.memory_space<vmem>>, vector<64x32xf32>
    %50 = arith.mulf %49, %48 : vector<64x32xf32>
    %c1_i32 = arith.constant 1 : i32
    %51 = arith.muli %arg0, %c1_i32 : i32
    %52 = arith.addi %51, %arg1 : i32
    %c64_i32 = arith.constant 64 : i32
    %53 = arith.muli %52, %c64_i32 : i32
    %c64_i32_10 = arith.constant 64 : i32
    %54 = arith.subi %c64_i32_10, %53 : i32
    %c64_i32_11 = arith.constant 64 : i32
    %55 = arith.cmpi sge, %54, %c64_i32_11 : i32
    %56 = arith.extui %55 : i1 to i32
    %c0_i32_12 = arith.constant 0 : i32
    %57 = arith.cmpi ne, %56, %c0_i32_12 : i32
    scf.if %57 {
      %c0_15 = arith.constant 0 : index
      %c0_16 = arith.constant 0 : index
      %61 = vector.load %arg5[%c0_15, %c0_16] : memref<8x32xf32, #tpu.memory_space<vmem>>, vector<8x32xf32>
      %62 = vector.shape_cast %50 : vector<64x32xf32> to vector<8x8x32xf32>
      %cst_17 = arith.constant dense<0.000000e+00> : vector<8x32xf32>
      %63 = vector.multi_reduction <add>, %62, %cst_17 [0] : vector<8x8x32xf32> to vector<8x32xf32>
      %64 = arith.addf %61, %63 : vector<8x32xf32>
      %c0_18 = arith.constant 0 : index
      %c0_19 = arith.constant 0 : index
      %65 = vector.load %arg5[%c0_18, %c0_19] : memref<8x32xf32, #tpu.memory_space<vmem>>, vector<8x32xf32>
      tpu.vector_store %arg5[%c0_18, %c0_19], %64 {strides = array<i32>} : memref<8x32xf32, #tpu.memory_space<vmem>>, vector<8x32xf32>,
    } else {
    }
    %c64_i32_13 = arith.constant 64 : i32
    %58 = arith.cmpi slt, %54, %c64_i32_13 : i32
    %59 = arith.extui %58 : i1 to i32
    %c0_i32_14 = arith.constant 0 : i32
    %60 = arith.cmpi ne, %59, %c0_i32_14 : i32
    scf.if %60 {
      %61 = tpu.iota {dimensions = array<i32: 0>} : vector<64x32xi32>
      %c0_15 = arith.constant 0 : index
      %c0_16 = arith.constant 0 : index
      %62 = vector.load %arg5[%c0_15, %c0_16] : memref<8x32xf32, #tpu.memory_space<vmem>>, vector<8x32xf32>
      %63 = vector.broadcast %54 : i32 to vector<64x32xi32>
      %64 = arith.cmpi slt, %61, %63 : vector<64x32xi32>
      %cst_17 = arith.constant 0.000000e+00 : f32
      %65 = vector.broadcast %cst_17 : f32 to vector<64x32xf32>
      %66 = arith.select %64, %50, %65 : vector<64x32xi1>, vector<64x32xf32>
      %67 = vector.shape_cast %66 : vector<64x32xf32> to vector<8x8x32xf32>
      %cst_18 = arith.constant dense<0.000000e+00> : vector<8x32xf32>
      %68 = vector.multi_reduction <add>, %67, %cst_18 [0] : vector<8x8x32xf32> to vector<8x32xf32>
      %69 = arith.addf %62, %68 : vector<8x32xf32>
      %c0_19 = arith.constant 0 : index
      %c0_20 = arith.constant 0 : index
      %70 = vector.load %arg5[%c0_19, %c0_20] : memref<8x32xf32, #tpu.memory_space<vmem>>, vector<8x32xf32>
      tpu.vector_store %arg5[%c0_19, %c0_20], %69 {strides = array<i32>} : memref<8x32xf32, #tpu.memory_space<vmem>>, vector<8x32xf32>,
    } else {
    }
    return
  }
  func.func @transform_0(%arg0: i32, %arg1: i32) -> (i32, i32) {
    %c1_i32 = arith.constant 1 : i32
    %0 = arith.muli %arg0, %c1_i32 : i32
    %1 = arith.addi %0, %arg1 : i32
    %c0_i32 = arith.constant 0 : i32
    %2 = arith.minsi %1, %c0_i32 : i32
    %c0_i32_0 = arith.constant 0 : i32
    %c0_i32_1 = arith.constant 0 : i32
    return %2, %c0_i32_0 : i32, i32
  }
  func.func @transform_1(%arg0: i32, %arg1: i32) -> (i32, i32) {
    %c1_i32 = arith.constant 1 : i32
    %0 = arith.muli %arg0, %c1_i32 : i32
    %1 = arith.addi %0, %arg1 : i32
    %c0_i32 = arith.constant 0 : i32
    %2 = arith.minsi %1, %c0_i32 : i32
    %c0_i32_0 = arith.constant 0 : i32
    %c0_i32_1 = arith.constant 0 : i32
    return %2, %c0_i32_0 : i32, i32
  }
  func.func @transform_2(%arg0: i32, %arg1: i32) -> (i32, i32) {
    %c1_i32 = arith.constant 1 : i32
    %0 = arith.muli %arg0, %c1_i32 : i32
    %1 = arith.addi %0, %arg1 : i32
    %c0_i32 = arith.constant 0 : i32
    %2 = arith.minsi %1, %c0_i32 : i32
    %c0_i32_0 = arith.constant 0 : i32
    %c0_i32_1 = arith.constant 0 : i32
    return %2, %c0_i32_0 : i32, i32
  }
  func.func @transform_3(%arg0: i32, %arg1: i32) -> (i32, i32) {
    %c0_i32 = arith.constant 0 : i32
    %c0_i32_0 = arith.constant 0 : i32
    return %arg0, %c0_i32 : i32, i32
  }
}

</mosaic_0001>

<bundles_post_ra>
// kernel: tpu_custom_call.1
= control target key start
LH: loop header
LB: loop body
LE: loop exit
PB: predicated region body
PF: predicated region fallthrough
CT: control target
= control target key end

     0   :  { %8 = vsyncpa [#allocation3], 0  ;;  %s1595_s0 = inlined_call_operand.vmem [shape: f32[64,128], index: 0, kind: input, shape index: {}]   ;;  %s1596_s1 = inlined_call_operand.hbm [shape: f32[64,128], index: 1, kind: input, shape index: {}]   ;;  %s1597_s2 = inlined_call_operand.vmem [shape: f32[64,32], index: 2, kind: input, shape index: {}]   ;;  %s1598_s3 = inlined_call_operand.hbm [shape: f32[8,32], index: 3, kind: output, shape index: {}]  }
   0x1   :  { %9 = vsyncpa [#allocation4], 0  ;;  %s1170_s12 = smov [#allocation2]   ;;  %s1122_s16 = scalar_lea.hbm %s1596_s1, 1024 }
   0x2   :  { %s35_s13 = sshll.u32 %s1170_s12, 4  ;;  %p1123_p0 = scmp.ne.s32.totalorder %s1596_s1, %s1122_s16  ;;  %s36_s13 = int_to_ptr.vmem [resolvable:$true] %s35_s13 }
   0x3   :  { %p1126_p1 = scmp.lt.u32.totalorder %s1122_s16, %s1596_s1 }
   0x5   :  { %p1128_p2 = pnand %p1126_p1, %p1123_p0 }
   0x7   :  { %1131 = shalt.err (!%p1128_p2)
}
   0x8   :  { %s1132_s21 = scalar_lea.vmem %s36_s13, 1024  ;;  %p1137_p4 = scmp.lt.s32.totalorder %s36_s13, %s36_s13 }
   0x9   :  { %p1133_p3 = scmp.ne.s32.totalorder %s36_s13, %s1132_s21  ;;  %p1138_p5 = scmp.lt.s32.totalorder %s1132_s21, %s1132_s21 }
   0xb   :  { %p1139_p6 = por %p1138_p5, %p1137_p4 }
   0xd   :  { %p1140_p7 = pnand %p1139_p6, %p1133_p3 }
   0xf   :  { %1143 = shalt.err (!%p1140_p7)
}
  0x10   :  { %s1171_s22 = smov 128   ;;  %s1172_s23 = smov 8  }
  0x11   :  { %41 = dma.hbm_to_vmem [thread:$0]  %s1596_s1, 1024, %s36_s13, [#allocation3], %s1171_s22, %s1171_s22, %s1172_s23  }
  0x12   :  { %1166 = dma.done.wait [#allocation3], 1024  }
  0x13   :  { %1167 = vsyncadd [#allocation3], 4294966272  ;;  %v1213_v0 = vld [vmem:[%s1595_s0 + $0x8] sm:$0xff]  ;;  %v109_v1 = vld [vmem:[%s1595_s0] sm:$0xff]  ;;  %s1173_s30 = smov 126   ;;  %v397_v32 = vlaneseq  ;;  %s1177_s1 = smov [#allocation5]  }
  0x14   :  { %v118_v2 = vld [vmem:[#allocation2 + $0x8] sm:$0xff]  ;;  %151 = vrot.lane.b32.xlu1 %v1213_v0, %s1173_s30  ;;  %149 = vrot.lane.b32.xlu0 %v109_v1, %s1173_s30  ;;  %v1226_v4 = vld [vmem:[%s1595_s0 + $0x10] sm:$0xff]  ;;  %v117_v6 = vld [vmem:[#allocation2] sm:$0xff]  ;;  %v1175_v43 = vmov 1.0|1.0   ;;  %s811_s4 = sshll.u32 %s1177_s1, 4  ;;  %s812_s4 = int_to_ptr.vmem [resolvable:$true] %s811_s4 }
  0x15   :  { %v1221_v3 = vmax.f32 %v118_v2, 0.0  ;;  %v119_v5 = vld [vmem:[#allocation2 + $0x10] sm:$0xff]  ;;  %v1234_v8 = vmax.f32 %v117_v6, 0.0  ;;  %v120_v11 = vld [vmem:[#allocation2 + $0x18] sm:$0xff]  ;;  %v121_v16 = vld [vmem:[#allocation2 + $0x20] sm:$0xff]  ;;  %v1342_v33 = vshrl.u32 %v397_v32, 7  ;;  %p1149_p9 = scmp.lt.s32.totalorder %s812_s4, %s812_s4 }
  0x16   :  { %v1232_v7 = vmax.f32 %v119_v5, 0.0  ;;  %v1251_v12 = vmax.f32 %v120_v11, 0.0  ;;  %v1256_v13 = vld [vmem:[%s1595_s0 + $0x18] sm:$0xff]  ;;  %v1274_v17 = vmax.f32 %v121_v16, 0.0  ;;  %v1279_v18 = vld [vmem:[%s1595_s0 + $0x20] sm:$0xff]  ;;  %v122_v19 = vld [vmem:[#allocation2 + $0x28] sm:$0xff] }
  0x17   :  { %v1242_v9 = vmin.f32 %v1213_v0, %v1221_v3  ;;  %v1245_v10 = vmin.f32 %v109_v1, %v1234_v8  ;;  %v1285_v20 = vmax.f32 %v122_v19, 0.0  ;;  %v1290_v21 = vld [vmem:[%s1595_s0 + $0x28] sm:$0xff]  ;;  %v123_v24 = vld [vmem:[#allocation2 + $0x30] sm:$0xff]  ;;  %v124_v27 = vld [vmem:[#allocation2 + $0x38] sm:$0xff]  ;;  %v415_v34 = vand.u32 127, %v397_v32 }
  0x18   :  { %231 = vrot.lane.b32.xlu1 %v1221_v3, %s1173_s30  ;;  %153 = vrot.lane.b32.xlu0 %v1226_v4, %s1173_s30  ;;  %v1264_v14 = vmin.f32 %v1256_v13, %v1251_v12  ;;  %v1268_v15 = vmin.f32 %v1226_v4, %v1232_v7  ;;  %v1302_v23 = vmin.f32 %v1279_v18, %v1274_v17  ;;  %v1308_v25 = vmax.f32 %v123_v24, 0.0  ;;  %v1313_v26 = vld [vmem:[%s1595_s0 + $0x30] sm:$0xff]  ;;  %v1324_v29 = vld [vmem:[%s1595_s0 + $0x38] sm:$0xff]  ;;  %s1174_s0 = smov 127  }
  0x19   :  { %v1298_v22 = vmin.f32 %v1290_v21, %v1285_v20  ;;  %v1319_v28 = vmax.f32 %v124_v27, 0.0  ;;  %v399_v38 = vadd.s32 8, %v1342_v33  ;;  %v1347_v39 = vmul.u32 4, %v415_v34 }
  0x1a   :  { %v1336_v31 = vmin.f32 %v1313_v26, %v1308_v25  ;;  %v400_v44 = vadd.s32 16, %v1342_v33  ;;  %v401_v45 = vadd.s32 24, %v1342_v33  ;;  %v402_v50 = vadd.s32 32, %v1342_v33 }
  0x1b   :  { %v1332_v30 = vmin.f32 %v1324_v29, %v1319_v28  ;;  %vm417_vm0 = vcmp.eq.s32.totalorder %v1342_v33, %v1347_v39  ;;  %vm418_vm1 = vcmp.eq.s32.totalorder %v399_v38, %v1347_v39  ;;  %v403_v51 = vadd.s32 40, %v1342_v33 }
  0x1c   :  { %233 = vrot.lane.b32.xlu1 %v1232_v7, %s1173_s30  ;;  %229 = vrot.lane.b32.xlu0 %v1234_v8, %s1173_s30  ;;  %vm1018_vm2 = vmpackc.low %vm418_vm1, %vm417_vm0  ;;  %vm419_vm3 = vcmp.eq.s32.totalorder %v400_v44, %v1347_v39  ;;  %vm420_vm4 = vcmp.eq.s32.totalorder %v401_v45, %v1347_v39  ;;  %vm421_vm6 = vcmp.eq.s32.totalorder %v402_v50, %v1347_v39  ;;  %v404_v55 = vadd.s32 48, %v1342_v33 }
  0x1d   :  { %1019 = vmatprep.subr.msk.bf16.mxu0 %vm1018_vm2, %v1175_v43  ;;  %1051 = vmatprep.subr.msk.bf16.mxu1 %vm1018_vm2, %v1175_v43  ;;  %vm1022_vm5 = vmpackc.low %vm420_vm4, %vm419_vm3  ;;  %vm422_vm7 = vcmp.eq.s32.totalorder %v403_v51, %v1347_v39  ;;  %v405_v56 = vadd.s32 56, %v1342_v33  ;;  %v406_v61 = vadd.s32 64, %v1342_v33  ;;  %v407_v62 = vadd.s32 72, %v1342_v33 }
  0x1e   :  { %1021 = vmatpush3.bf16.msk.msra.mxu0 %vm1018_vm2, %v1175_v43  ;;  %1053 = vmatpush3.bf16.msk.msra.mxu1 %vm1018_vm2, %v1175_v43  ;;  %vm1026_vm8 = vmpackc.low %vm422_vm7, %vm421_vm6  ;;  %vm423_vm9 = vcmp.eq.s32.totalorder %v404_v55, %v1347_v39  ;;  %v409_v2 = vadd.s32 88, %v1342_v33  ;;  %v411_v11 = vadd.s32 104, %v1342_v33  ;;  %v413_v19 = vadd.s32 120, %v1342_v33 }
  0x1f   :  { %1023 = vmatprep.subr.msk.bf16.mxu0 %vm1022_vm5, %v1175_v43  ;;  %1055 = vmatprep.subr.msk.bf16.mxu1 %vm1022_vm5, %v1175_v43  ;;  %vm424_vm10 = vcmp.eq.s32.totalorder %v405_v56, %v1347_v39  ;;  %vm425_vm12 = vcmp.eq.s32.totalorder %v406_v61, %v1347_v39  ;;  %vm426_vm13 = vcmp.eq.s32.totalorder %v407_v62, %v1347_v39 }
  0x20   :  { %311 = vrot.lane.b32.xlu1 %v1242_v9, %s1173_s30  ;;  %309 = vrot.lane.b32.xlu0 %v1245_v10, %s1173_s30  ;;  %vm1030_vm11 = vmpackc.low %vm424_vm10, %vm423_vm9  ;;  %vm428_vm0 = vcmp.eq.s32.totalorder %v409_v2, %v1347_v39  ;;  %vm430_vm3 = vcmp.eq.s32.totalorder %v411_v11, %v1347_v39  ;;  %vm432_vm6 = vcmp.eq.s32.totalorder %v413_v19, %v1347_v39 }
  0x21   :  { %vm1034_vm14 = vmpackc.low %vm426_vm13, %vm425_vm12 }
  0x22   :  { %1025 = vmatpush3.bf16.msk.msra.mxu0 %vm1022_vm5, %v1175_v43  ;;  %1057 = vmatpush3.bf16.msk.msra.mxu1 %vm1022_vm5, %v1175_v43 }
  0x23   :  { %1027 = vmatprep.subr.msk.bf16.mxu0 %vm1026_vm8, %v1175_v43  ;;  %1059 = vmatprep.subr.msk.bf16.mxu1 %vm1026_vm8, %v1175_v43 }
  0x24   :  { %235 = vrot.lane.b32.xlu1 %v1251_v12, %s1173_s30  ;;  %155 = vrot.lane.b32.xlu0 %v1256_v13, %s1173_s30 }
  0x26   :  { %1029 = vmatpush3.bf16.msk.msra.mxu0 %vm1026_vm8, %v1175_v43  ;;  %1061 = vmatpush3.bf16.msk.msra.mxu1 %vm1026_vm8, %v1175_v43  ;;  %vm107_vm8 = vcmask 261120  }
  0x27   :  { %1031 = vmatprep.subr.msk.bf16.mxu0 %vm1030_vm11, %v1175_v43  ;;  %1063 = vmatprep.subr.msk.bf16.mxu1 %vm1030_vm11, %v1175_v43 }
  0x28   :  { %315 = vrot.lane.b32.xlu1 %v1264_v14, %s1173_s30  ;;  %313 = vrot.lane.b32.xlu0 %v1268_v15, %s1173_s30 }
  0x2a   :  { %1033 = vmatpush3.bf16.msk.msra.mxu0 %vm1030_vm11, %v1175_v43  ;;  %1065 = vmatpush3.bf16.msk.msra.mxu1 %vm1030_vm11, %v1175_v43 }
  0x2b   :  { %1035 = vmatprep.subr.msk.bf16.mxu0 %vm1034_vm14, %v1175_v43  ;;  %1067 = vmatprep.subr.msk.bf16.mxu1 %vm1034_vm14, %v1175_v43 }
  0x2c   :  { %237 = vrot.lane.b32.xlu1 %v1274_v17, %s1173_s30  ;;  %157 = vrot.lane.b32.xlu0 %v1279_v18, %s1173_s30 }
  0x2e   :  { %1037 = vmatpush3.bf16.msk.msra.mxu0 %vm1034_vm14, %v1175_v43  ;;  %1069 = vmatpush3.bf16.msk.msra.mxu1 %vm1034_vm14, %v1175_v43 }
  0x30   :  { %239 = vrot.lane.b32.xlu1 %v1285_v20, %s1173_s30  ;;  %159 = vrot.lane.b32.xlu0 %v1290_v21, %s1173_s30 }
  0x34   :  { %319 = vrot.lane.b32.xlu1 %v1298_v22, %s1173_s30  ;;  %317 = vrot.lane.b32.xlu0 %v1302_v23, %s1173_s30 }
  0x38   :  { %241 = vrot.lane.b32.xlu1 %v1308_v25, %s1173_s30  ;;  %161 = vrot.lane.b32.xlu0 %v1313_v26, %s1173_s30 }
  0x3c   :  { %243 = vrot.lane.b32.xlu1 %v1319_v28, %s1173_s30  ;;  %163 = vrot.lane.b32.xlu0 %v1324_v29, %s1173_s30 }
  0x40   :  { %323 = vrot.lane.b32.xlu1 %v1332_v30, %s1173_s30  ;;  %321 = vrot.lane.b32.xlu0 %v1336_v31, %s1173_s30 }
  0x86   :  { %v152_v35 = vpop.permute.xlu1 %151  ;;  %v150_v36 = vpop.permute.xlu0 %149 }
  0x87   :  { %v1344_v37 = vadd.f32 %v150_v36, %v109_v1  ;;  %v1355_v42 = vadd.f32 %v152_v35, %v1213_v0  ;;  %v408_v1 = vadd.s32 80, %v1342_v33 }
  0x89   :  { %189 = vrot.lane.b32.xlu0 %v1344_v37, %s1174_s0  ;;  %vm427_vm15 = vcmp.eq.s32.totalorder %v408_v1, %v1347_v39 }
  0x8a   :  { %v232_v40 = vpop.permute.xlu1 %231  ;;  %v154_v41 = vpop.permute.xlu0 %153  ;;  %vm1038_vm1 = vmpackc.low %vm428_vm0, %vm427_vm15 }
  0x8b   :  { %v1368_v48 = vadd.f32 %v154_v41, %v1226_v4  ;;  %v1390_v54 = vadd.f32 %v232_v40, %v1221_v3  ;;  %1039 = vmatprep.subr.msk.bf16.mxu0 %vm1038_vm1, %v1175_v43  ;;  %1071 = vmatprep.subr.msk.bf16.mxu1 %vm1038_vm1, %v1175_v43 }
  0x8c   :  { %1041 = vmatpush3.bf16.msk.msra.mxu0 %vm1038_vm1, %v1175_v43  ;;  %1073 = vmatpush3.bf16.msk.msra.mxu1 %vm1038_vm1, %v1175_v43 }
  0x8d   :  { %191 = vrot.lane.b32.xlu0 %v1355_v42, %s1174_s0 }
  0x8e   :  { %v234_v46 = vpop.permute.xlu1 %233  ;;  %v230_v47 = vpop.permute.xlu0 %229 }
  0x8f   :  { %v1371_v49 = vadd.f32 %v230_v47, %v1234_v8  ;;  %v1403_v59 = vadd.f32 %v234_v46, %v1232_v7  ;;  %v410_v8 = vadd.s32 96, %v1342_v33 }
  0x91   :  { %269 = vrot.lane.b32.xlu1 %v1371_v49, %s1174_s0  ;;  %193 = vrot.lane.b32.xlu0 %v1368_v48, %s1174_s0  ;;  %vm429_vm2 = vcmp.eq.s32.totalorder %v410_v8, %v1347_v39 }
  0x92   :  { %v1385_v52 = vpop.permute.xlu1 %311  ;;  %v1387_v53 = vpop.permute.xlu0 %309  ;;  %vm1042_vm4 = vmpackc.low %vm430_vm3, %vm429_vm2 }
  0x93   :  { %1043 = vmatprep.subr.msk.bf16.mxu0 %vm1042_vm4, %v1175_v43  ;;  %1075 = vmatprep.subr.msk.bf16.mxu1 %vm1042_vm4, %v1175_v43 }
  0x94   :  { %1045 = vmatpush3.bf16.msk.msra.mxu0 %vm1042_vm4, %v1175_v43  ;;  %1077 = vmatpush3.bf16.msk.msra.mxu1 %vm1042_vm4, %v1175_v43 }
  0x95   :  { %271 = vrot.lane.b32.xlu1 %v1390_v54, %s1174_s0 }
  0x96   :  { %v236_v57 = vpop.permute.xlu1 %235  ;;  %v156_v58 = vpop.permute.xlu0 %155 }
  0x97   :  { %v1406_v60 = vadd.f32 %v156_v58, %v1256_v13  ;;  %v1427_v3 = vadd.f32 %v236_v57, %v1251_v12 }
  0x99   :  { %273 = vrot.lane.b32.xlu1 %v1403_v59, %s1174_s0  ;;  %195 = vrot.lane.b32.xlu0 %v1406_v60, %s1174_s0 }
  0x9a   :  { %v1420_v63 = vpop.permute.xlu1 %315  ;;  %v1422_v0 = vpop.permute.xlu0 %313 }
  0x9d   :  { %275 = vrot.lane.b32.xlu1 %v1427_v3, %s1174_s0 }
  0x9e   :  { %v238_v4 = vpop.permute.xlu1 %237  ;;  %v158_v5 = vpop.permute.xlu0 %157 }
  0x9f   :  { %v1440_v6 = vadd.f32 %v238_v4, %v1274_v17  ;;  %v1443_v7 = vadd.f32 %v158_v5, %v1279_v18  ;;  %v412_v18 = vadd.s32 112, %v1342_v33 }
  0xa1   :  { %277 = vrot.lane.b32.xlu1 %v1440_v6, %s1174_s0  ;;  %197 = vrot.lane.b32.xlu0 %v1443_v7, %s1174_s0  ;;  %vm431_vm5 = vcmp.eq.s32.totalorder %v412_v18, %v1347_v39 }
  0xa2   :  { %v240_v12 = vpop.permute.xlu1 %239  ;;  %v160_v13 = vpop.permute.xlu0 %159  ;;  %vm1046_vm7 = vmpackc.low %vm432_vm6, %vm431_vm5 }
  0xa3   :  { %v1456_v16 = vadd.f32 %v240_v12, %v1285_v20  ;;  %v1459_v17 = vadd.f32 %v160_v13, %v1290_v21  ;;  %1047 = vmatprep.subr.msk.bf16.mxu0 %vm1046_vm7, %v1175_v43  ;;  %1079 = vmatprep.subr.msk.bf16.mxu1 %vm1046_vm7, %v1175_v43 }
  0xa4   :  { %1049 = vmatpush3.bf16.msk.msra.mxu0 %vm1046_vm7, %v1175_v43  ;;  %1081 = vmatpush3.bf16.msk.msra.mxu1 %vm1046_vm7, %v1175_v43 }
  0xa5   :  { %279 = vrot.lane.b32.xlu1 %v1456_v16, %s1174_s0  ;;  %199 = vrot.lane.b32.xlu0 %v1459_v17, %s1174_s0 }
  0xa6   :  { %v320_v20 = vpop.permute.xlu1 %319  ;;  %v318_v21 = vpop.permute.xlu0 %317 }
  0xaa   :  { %v242_v24 = vpop.permute.xlu1 %241  ;;  %v162_v27 = vpop.permute.xlu0 %161 }
  0xab   :  { %v1478_v32 = vadd.f32 %v242_v24, %v1308_v25  ;;  %v1481_v33 = vadd.f32 %v162_v27, %v1313_v26  ;;  %v334_v25 = vadd.f32 %v1385_v52, %v1242_v9  ;;  %v333_v26 = vadd.f32 %v1387_v53, %v1245_v10 }
  0xac   :  { %v1510_v9 = vadd.f32 %v320_v20, %v1298_v22  ;;  %v1513_v10 = vadd.f32 %v318_v21, %v1302_v23 }
  0xad   :  { %281 = vrot.lane.b32.xlu1 %v1478_v32, %s1174_s0  ;;  %201 = vrot.lane.b32.xlu0 %v1481_v33, %s1174_s0 }
  0xae   :  { %v244_v34 = vpop.permute.xlu1 %243  ;;  %v164_v35 = vpop.permute.xlu0 %163 }
  0xaf   :  { %v1488_v36 = vadd.f32 %v244_v34, %v1319_v28  ;;  %v1491_v38 = vadd.f32 %v164_v35, %v1324_v29  ;;  %v336_v28 = vadd.f32 %v1420_v63, %v1264_v14  ;;  %v335_v29 = vadd.f32 %v1422_v0, %v1268_v15 }
  0xb1   :  { %283 = vrot.lane.b32.xlu1 %v1488_v36, %s1174_s0  ;;  %203 = vrot.lane.b32.xlu0 %v1491_v38, %s1174_s0 }
  0xb2   :  { %v324_v39 = vpop.permute.xlu1 %323  ;;  %v322_v40 = vpop.permute.xlu0 %321 }
  0xb3   :  { %v1520_v14 = vadd.f32 %v324_v39, %v1332_v30  ;;  %v1523_v15 = vadd.f32 %v322_v40, %v1336_v31 }
  0xb5   :  { %351 = vrot.lane.b32.xlu1 %v334_v25, %s1174_s0  ;;  %349 = vrot.lane.b32.xlu0 %v333_v26, %s1174_s0 }
  0xb9   :  { %355 = vrot.lane.b32.xlu1 %v336_v28, %s1174_s0  ;;  %353 = vrot.lane.b32.xlu0 %v335_v29, %s1174_s0 }
  0xbd   :  { %359 = vrot.lane.b32.xlu1 %v1510_v9, %s1174_s0  ;;  %357 = vrot.lane.b32.xlu0 %v1513_v10, %s1174_s0 }
  0xc1   :  { %363 = vrot.lane.b32.xlu1 %v1520_v14, %s1174_s0  ;;  %361 = vrot.lane.b32.xlu0 %v1523_v15, %s1174_s0 }
  0xfb   :  { %v190_v22 = vpop.permute.xlu0 %189 }
  0xfc   :  { %v213_v61 = vmul.f32 %v190_v22, %v1344_v37 }
  0xff   :  { %v192_v41 = vpop.permute.xlu0 %191 }
 0x100   :  { %v214_v62 = vmul.f32 %v192_v41, %v1355_v42 }
 0x103   :  { %v270_v23 = vpop.permute.xlu1 %269  ;;  %v194_v45 = vpop.permute.xlu0 %193 }
 0x104   :  { %v293_v55 = vmul.f32 %v270_v23, %v1371_v49  ;;  %v215_v49 = vmul.f32 %v194_v45, %v1368_v48 }
 0x106   :  { %v381_v2 = vadd.f32 %v293_v55, %v213_v61 }
 0x107   :  { %v272_v43 = vpop.permute.xlu1 %271 }
 0x108   :  { %v294_v56 = vmul.f32 %v272_v43, %v1390_v54 }
 0x10a   :  { %v382_v63 = vadd.f32 %v294_v56, %v214_v62 }
 0x10b   :  { %v274_v44 = vpop.permute.xlu1 %273  ;;  %v196_v47 = vpop.permute.xlu0 %195 }
 0x10c   :  { %v295_v4 = vmul.f32 %v274_v44, %v1403_v59  ;;  %v216_v54 = vmul.f32 %v196_v47, %v1406_v60 }
 0x10e   :  { %v383_v20 = vadd.f32 %v295_v4, %v215_v49 }
 0x10f   :  { %v276_v46 = vpop.permute.xlu1 %275 }
 0x110   :  { %v296_v5 = vmul.f32 %v276_v46, %v1427_v3 }
 0x112   :  { %v384_v21 = vadd.f32 %v296_v5, %v216_v54 }
 0x113   :  { %v278_v50 = vpop.permute.xlu1 %277  ;;  %v198_v30 = vpop.permute.xlu0 %197 }
 0x114   :  { %v297_v37 = vmul.f32 %v278_v50, %v1440_v6  ;;  %v217_v42 = vmul.f32 %v198_v30, %v1443_v7 }
 0x116   :  { %v385_v34 = vadd.f32 %v297_v37, %v217_v42 }
 0x117   :  { %v280_v51 = vpop.permute.xlu1 %279  ;;  %v200_v52 = vpop.permute.xlu0 %199 }
 0x118   :  { %v298_v18 = vmul.f32 %v280_v51, %v1456_v16  ;;  %v218_v19 = vmul.f32 %v200_v52, %v1459_v17 }
 0x11a   :  { %v386_v6 = vadd.f32 %v298_v18, %v218_v19 }
 0x11f   :  { %v282_v31 = vpop.permute.xlu1 %281  ;;  %v202_v53 = vpop.permute.xlu0 %201 }
 0x120   :  { %v299_v7 = vmul.f32 %v282_v31, %v1478_v32  ;;  %v219_v16 = vmul.f32 %v202_v53, %v1481_v33 }
 0x122   :  { %v387_v33 = vadd.f32 %v299_v7, %v219_v16  ;;  %v723_v16 = vld [vmem:[%s1597_s2] sm:$0xff] }
 0x123   :  { %v284_v57 = vpop.permute.xlu1 %283  ;;  %v204_v58 = vpop.permute.xlu0 %203 }
 0x127   :  { %v352_v0 = vpop.permute.xlu1 %351  ;;  %v350_v1 = vpop.permute.xlu0 %349 }
 0x128   :  { %v374_v8 = vmul.f32 %v352_v0, %v334_v25  ;;  %v373_v11 = vmul.f32 %v350_v1, %v333_v26  ;;  %v300_v25 = vmul.f32 %v284_v57, %v1488_v36  ;;  %v220_v26 = vmul.f32 %v204_v58, %v1491_v38 }
 0x12a   :  { %v390_v12 = vsub.f32 %v382_v63, %v374_v8  ;;  %962 = vmatprep.mubr.f32.mxu0 %v373_v11  ;;  %v389_v13 = vsub.f32 %v381_v2, %v373_v11  ;;  %v388_v23 = vadd.f32 %v300_v25, %v220_v26 }
 0x12b   :  { %v356_v59 = vpop.permute.xlu1 %355  ;;  %963 = vmatmul.mubr.f32.vlgmr.msra.gmra.mrb[0].mxu0 %v374_v8  ;;  %v354_v3 = vpop.permute.xlu0 %353 }
 0x12c   :  { %v376_v24 = vmul.f32 %v356_v59, %v336_v28  ;;  %v375_v48 = vmul.f32 %v354_v3, %v335_v29  ;;  %1006 = vmatprep.mubr.f32.mxu1 %v389_v13 }
 0x12d   :  { %1007 = vmatmul.mubr.f32.vlgmr.msra.gmra.mrb[0].mxu1 %v390_v12 }
 0x12e   :  { %v392_v60 = vsub.f32 %v384_v21, %v376_v24  ;;  %v391_v27 = vsub.f32 %v383_v20, %v375_v48  ;;  %965 = vmatprep.mubr.f32.mxu0 %v375_v48 }
 0x12f   :  { %v360_v35 = vpop.permute.xlu1 %359  ;;  %966 = vmatmul.mubr.f32.gmra.mrb[2].mxu0 %v376_v24  ;;  %v358_v17 = vpop.permute.xlu0 %357 }
 0x130   :  { %v378_v28 = vmul.f32 %v360_v35, %v1510_v9  ;;  %v377_v29 = vmul.f32 %v358_v17, %v1513_v10  ;;  %1009 = vmatprep.mubr.f32.mxu1 %v391_v27  ;;  %v1176_v10 = vmov 0.0  }
 0x131   :  { %1010 = vmatmul.mubr.f32.gmra.mrb[2].mxu1 %v392_v60  ;;  %108 = vst.msk [vmem:[#allocation5] sm:$0xff] %vm107_vm8, %v1176_v10 }
 0x132   :  { %v394_v39 = vsub.f32 %v386_v6, %v378_v28  ;;  %v393_v40 = vsub.f32 %v385_v34, %v377_v29  ;;  %968 = vmatprep.mubr.f32.mxu0 %v377_v29  ;;  %v724_v34 = vld [vmem:[%s1597_s2 + $0x8] sm:$0xff] }
 0x133   :  { %v364_v22 = vpop.permute.xlu1 %363  ;;  %969 = vmatmul.mubr.f32.gmra.mrb[4].mxu0 %v378_v28  ;;  %v362_v32 = vpop.permute.xlu0 %361 }
 0x134   :  { %v380_v41 = vmul.f32 %v364_v22, %v1520_v14  ;;  %v379_v36 = vmul.f32 %v362_v32, %v1523_v15  ;;  %1012 = vmatprep.mubr.f32.mxu1 %v393_v40  ;;  %v726_v32 = vld [vmem:[%s1597_s2 + $0x18] sm:$0xff] }
 0x135   :  { %1013 = vmatmul.mubr.f32.gmra.mrb[4].mxu1 %v394_v39 }
 0x136   :  { %v396_v38 = vsub.f32 %v388_v23, %v380_v41  ;;  %v395_v9 = vsub.f32 %v387_v33, %v379_v36  ;;  %971 = vmatprep.mubr.f32.mxu0 %v379_v36  ;;  %v725_v33 = vld [vmem:[%s1597_s2 + $0x10] sm:$0xff] }
 0x137   :  { %972 = vmatmul.mubr.f32.gmra.mrb[6].mxu0 %v380_v41 }
 0x138   :  { %1015 = vmatprep.mubr.f32.mxu1 %v395_v9 }
 0x139   :  { %1016 = vmatmul.mubr.f32.gmra.mrb[6].mxu1 %v396_v38 }
 0x1fe   :  { %v964_v43 = vpop.f32.mrb[0].mxu0 }
 0x1ff   :  { %v531_v44 = vpop.f32.mrb[1].mxu0 }
 0x200   :  { %v1008_v45 = vpop.f32.mrb[0].mxu1 }
 0x201   :  { %1090 = vrcp.f32 %v1008_v45  ;;  %v636_v46 = vpop.f32.mrb[1].mxu1 }
 0x202   :  { %1092 = vrcp.f32 %v636_v46  ;;  %v967_v14 = vpop.f32.mrb[2].mxu0 }
 0x203   :  { %v541_v15 = vpop.f32.mrb[3].mxu0 }
 0x204   :  { %v1011_v47 = vpop.f32.mrb[2].mxu1 }
 0x205   :  { %1094 = vrcp.f32 %v1011_v47  ;;  %v646_v50 = vpop.f32.mrb[3].mxu1 }
 0x206   :  { %1096 = vrcp.f32 %v646_v50  ;;  %v970_v30 = vpop.f32.mrb[4].mxu0 }
 0x207   :  { %v551_v51 = vpop.f32.mrb[5].mxu0 }
 0x208   :  { %v1014_v52 = vpop.f32.mrb[4].mxu1 }
 0x209   :  { %1098 = vrcp.f32 %v1014_v52  ;;  %v656_v31 = vpop.f32.mrb[5].mxu1 }
 0x20a   :  { %1100 = vrcp.f32 %v656_v31  ;;  %v973_v53 = vpop.f32.mrb[6].mxu0 }
 0x20b   :  { %v1091_v55 = vpop.eup %1090  ;;  %v561_v56 = vpop.f32.mrb[7].mxu0 }
 0x20c   :  { %v1093_v57 = vpop.eup %1092  ;;  %v678_v58 = vmul.f32 %v1091_v55, %v964_v43  ;;  %v1017_v61 = vpop.f32.mrb[6].mxu1 }
 0x20d   :  { %v676_v62 = vmul.f32 %v1093_v57, %v531_v44  ;;  %1102 = vrcp.f32 %v1017_v61  ;;  %v666_v63 = vpop.f32.mrb[7].mxu1  ;;  %v729_v61 = vld [vmem:[%s1597_s2 + $0x30] sm:$0xff] }
 0x20e   :  { %v692_v0 = vmax.f32 %v678_v58, 1e-07  ;;  %1104 = vrcp.f32 %v666_v63 }
 0x20f   :  { %v1095_v1 = vpop.eup %1094  ;;  %v691_v2 = vmax.f32 %v676_v62, 1e-07  ;;  %v730_v62 = vld [vmem:[%s1597_s2 + $0x38] sm:$0xff] }
 0x210   :  { %v1097_v4 = vpop.eup %1096  ;;  %1106 = vlog2.f32 %v692_v0  ;;  %v682_v5 = vmul.f32 %v1095_v1, %v967_v14  ;;  %v728_v14 = vld [vmem:[%s1597_s2 + $0x28] sm:$0xff] }
 0x211   :  { %1108 = vlog2.f32 %v691_v2  ;;  %v680_v8 = vmul.f32 %v1097_v4, %v541_v15  ;;  %v727_v15 = vld [vmem:[%s1597_s2 + $0x20] sm:$0xff]  ;;  %s1144_s2 = scalar_lea.vmem %s812_s4, 128 }
 0x212   :  { %v694_v11 = vmax.f32 %v682_v5, 1e-07  ;;  %p1145_p8 = scmp.ne.s32.totalorder %s812_s4, %s1144_s2  ;;  %p1150_p10 = scmp.lt.s32.totalorder %s1144_s2, %s1144_s2 }
 0x213   :  { %v1099_v49 = vpop.eup %1098  ;;  %v693_v54 = vmax.f32 %v680_v8, 1e-07 }
 0x214   :  { %v1101_v12 = vpop.eup %1100  ;;  %1110 = vlog2.f32 %v694_v11  ;;  %v686_v13 = vmul.f32 %v1099_v49, %v970_v30  ;;  %p1151_p11 = por %p1150_p10, %p1149_p9 }
 0x215   :  { %1112 = vlog2.f32 %v693_v54  ;;  %v684_v37 = vmul.f32 %v1101_v12, %v551_v51  ;;  %v746_v12 = vld [vmem:[#allocation5] sm:$0xff] }
 0x216   :  { %v696_v42 = vmax.f32 %v686_v13, 1e-07  ;;  %p1152_p12 = pnand %p1151_p11, %p1145_p8 }
 0x217   :  { %v1103_v18 = vpop.eup %1102  ;;  %v695_v19 = vmax.f32 %v684_v37, 1e-07 }
 0x218   :  { %v1105_v59 = vpop.eup %1104  ;;  %1114 = vlog2.f32 %v696_v42  ;;  %v690_v3 = vmul.f32 %v1103_v18, %v973_v53 }
 0x219   :  { %1116 = vlog2.f32 %v695_v19  ;;  %v688_v20 = vmul.f32 %v1105_v59, %v561_v56 }
 0x21a   :  { %v1107_v21 = vpop.eup %1106  ;;  %v698_v24 = vmax.f32 %v690_v3, 1e-07 }
 0x21b   :  { %v1109_v48 = vpop.eup %1108  ;;  %v702_v60 = vmul.f32 0.6931472, %v1107_v21  ;;  %v697_v27 = vmax.f32 %v688_v20, 1e-07 }
 0x21c   :  { %v700_v6 = vmul.f32 0.6931472, %v1109_v48  ;;  %1118 = vlog2.f32 %v698_v24 }
 0x21d   :  { %v716_v7 = vsub.f32 0.0, %v702_v60  ;;  %1120 = vlog2.f32 %v697_v27 }
 0x21e   :  { %v1111_v35 = vpop.eup %1110  ;;  %v715_v17 = vsub.f32 0.0, %v700_v6 }
 0x21f   :  { %v1113_v25 = vpop.eup %1112  ;;  %v732_v26 = vmul.f32 %v724_v34, %v716_v7  ;;  %v706_v28 = vmul.f32 0.6931472, %v1111_v35 }
 0x220   :  { %v731_v29 = vmul.f32 %v723_v16, %v715_v17  ;;  %v704_v39 = vmul.f32 0.6931472, %v1113_v25 }
 0x221   :  { %v749_v40 = vsel %vm107_vm8, %v732_v26, 0.0  ;;  %v718_v22 = vsub.f32 0.0, %v706_v28 }
 0x222   :  { %v1115_v23 = vpop.eup %1114  ;;  %v748_v41 = vsel %vm107_vm8, %v731_v29, 0.0  ;;  %v717_v36 = vsub.f32 0.0, %v704_v39 }
 0x223   :  { %v1117_v38 = vpop.eup %1116  ;;  %v750_v9 = vadd.f32 %v749_v40, %v748_v41  ;;  %v710_v10 = vmul.f32 0.6931472, %v1115_v23  ;;  %v734_v43 = vmul.f32 %v726_v32, %v718_v22 }
 0x224   :  { %v733_v44 = vmul.f32 %v725_v33, %v717_v36  ;;  %v708_v45 = vmul.f32 0.6931472, %v1117_v38 }
 0x225   :  { %v720_v46 = vsub.f32 0.0, %v710_v10  ;;  %v753_v53 = vsel %vm107_vm8, %v734_v43, 0.0 }
 0x226   :  { %v1119_v47 = vpop.eup %1118  ;;  %v751_v50 = vsel %vm107_vm8, %v733_v44, 0.0  ;;  %v719_v30 = vsub.f32 0.0, %v708_v45 }
 0x227   :  { %v1121_v51 = vpop.eup %1120  ;;  %v752_v52 = vadd.f32 %v751_v50, %v750_v9  ;;  %v714_v31 = vmul.f32 0.6931472, %v1119_v47  ;;  %v736_v55 = vmul.f32 %v728_v14, %v720_v46 }
 0x228   :  { %v735_v56 = vmul.f32 %v727_v15, %v719_v30  ;;  %v712_v57 = vmul.f32 0.6931472, %v1121_v51 }
 0x229   :  { %v722_v58 = vsub.f32 0.0, %v714_v31  ;;  %v754_v63 = vadd.f32 %v753_v53, %v752_v52  ;;  %v757_v8 = vsel %vm107_vm8, %v736_v55, 0.0 }
 0x22a   :  { %v721_v0 = vsub.f32 0.0, %v712_v57  ;;  %v755_v1 = vsel %vm107_vm8, %v735_v56, 0.0 }
 0x22b   :  { %v756_v2 = vadd.f32 %v755_v1, %v754_v63  ;;  %v738_v5 = vmul.f32 %v730_v62, %v722_v58 }
 0x22c   :  { %v737_v4 = vmul.f32 %v729_v61, %v721_v0 }
 0x22d   :  { %v758_v11 = vadd.f32 %v757_v8, %v756_v2  ;;  %v761_v13 = vsel %vm107_vm8, %v738_v5, 0.0 }
 0x22e   :  { %v759_v49 = vsel %vm107_vm8, %v737_v4, 0.0 }
 0x22f   :  { %v760_v54 = vadd.f32 %v759_v49, %v758_v11 }
 0x231   :  { %v762_v37 = vadd.f32 %v761_v13, %v760_v54 }
 0x233   :  { %v763_v42 = vadd.f32 %v762_v37, %v746_v12 }
 0x235   :  { %764 = vst.msk [vmem:[#allocation5] sm:$0xff] %vm107_vm8, %v763_v42 }
 0x236   :  { %1155 = shalt.err (!%p1152_p12)
}
 0x237   :  { %s1156_s7 = scalar_lea.hbm %s1598_s3, 128 }
 0x238   :  { %p1157_p13 = scmp.ne.s32.totalorder %s1598_s3, %s1156_s7  ;;  %p1160_p0 = scmp.lt.u32.totalorder %s1156_s7, %s1598_s3 }
 0x23a   :  { %p1162_p1 = pnand %p1160_p0, %p1157_p13 }
 0x23c   :  { %1165 = shalt.err (!%p1162_p1)
}
 0x23d   :  { %814 = dma.vmem_to_hbm [thread:$0]  %s812_s4, 128, %s1598_s3, [#allocation4]  }
 0x23e   :  { %1168 = dma.done.wait [#allocation4], 128  }
 0x23f   :  { %1169 = vsyncadd [#allocation4], 4294967168 }
 0x240   :  { %818 = vsyncpa [#allocation3], 1 }
 0x241   :  { %819 = vsyncpa [#allocation4], 1 }

</bundles_post_ra>
